<compile_context>
chip_gen: v7x
topology: tpu7x:2x2x1
jax: 0.10.0
libtpu: 0.0.40
codegen_flags: <defaults>
</compile_context>

<pallas_src>
import jax
import jax.numpy as jnp
from jax.experimental import pallas as pl
from jax.experimental.pallas import tpu as pltpu


def _round_up(n, m):
    return ((n + m - 1) // m) * m


# ----------------------------- Pallas kernel --------------------------------
def fused_mlp_kernel(x_ref, w1_ref, b1_ref, w2_ref, b2_ref, wv_ref, bv_ref,
                     actor_ref, value_ref):
    """Fused actor+critic two-layer tanh MLP + fused critic_linear head.

    w1 = [Wc1 | Wa1]            (D, 2H)   -> one 128-lane-wide MXU pass
    w2 = blockdiag(Wc2, Wa2)    (2H, 2H)  -> one 128x128 MXU pass
    value = sum(h2[:, :H] * wv) + bv      -> VPU mul + XLU lane reduce (cheap)
    actor_ref gets h2[:, H:]; hidden_critic is never written to HBM.
    Biases / accumulation / tanh stay f32; x is cast to the compute dtype
    in-kernel (no wrapper cast pass).
    """
    x = x_ref[...].astype(w1_ref.dtype)
    h1 = jnp.tanh(
        jnp.dot(x, w1_ref[...], preferred_element_type=jnp.float32) + b1_ref[...]
    )
    h2 = jnp.tanh(
        jnp.dot(h1.astype(w2_ref.dtype), w2_ref[...],
                preferred_element_type=jnp.float32) + b2_ref[...]
    )
    H = actor_ref.shape[-1]
    value_ref[...] = (
        jnp.sum(h2[:, :H] * wv_ref[...], axis=-1, keepdims=True) + bv_ref[...]
    ).astype(value_ref.dtype)
    actor_ref[...] = h2[:, H:].astype(actor_ref.dtype)


# ------------------------------ host wrapper ---------------------------------
def policy_base_forward(x, rnn_hxs, masks, packed, *, batch_tile=2048):
    """Pallas equivalent of MLPBase.forward (non-recurrent).

    Returns (value, actor_features, rnn_hxs)."""
    B, D = x.shape
    H2 = packed["w1"].shape[1]          # 2 * hidden_size (128 for hidden=64)
    H = H2 // 2
    compute_dtype = packed["w1"].dtype  # set once at pack time (f32 or bf16)
    actor_dtype = compute_dtype         # bf16 writeback halves the output stream

    # Batch tile: multiple of 8 sublanes.  No wrapper padding — Pallas handles
    # the ragged last block.  If one tile would cover the whole batch but there
    # are enough rows to split, use >= 2 grid steps so the "parallel" batch axis
    # can shard across both v7x TensorCores (v5e/v6e: negligible cost).
    bt = _round_up(min(batch_tile, max(B, 1)), 8)
    if pl.cdiv(B, bt) == 1 and B >= 16:
        bt = _round_up(pl.cdiv(B, 2), 8)
    steps = pl.cdiv(B, bt)

    w_itemsize = jnp.dtype(compute_dtype).itemsize
    a_itemsize = jnp.dtype(actor_dtype).itemsize
    cost = pl.CostEstimate(
        # layer1: D x 2H dense; layer2: two H x H blocks; value head: H MACs/row
        flops=2 * B * (D * H2 + 2 * H * H + H),
        transcendentals=2 * B * H2,
        bytes_accessed=(
            B * D * 4                                   # x (f32 in)
            + (D * H2 + H2 * H2) * w_itemsize           # fused weights
            + (2 * H2 + H + 1) * 4                      # biases + value head
            + B * H * a_itemsize                        # actor features out
            + B * 4                                     # value out
        ),
    )

    actor_features, value = pl.pallas_call(
        fused_mlp_kernel,
        out_shape=(
            jax.ShapeDtypeStruct((B, H), actor_dtype),
            jax.ShapeDtypeStruct((B, 1), jnp.float32),
        ),
        grid_spec=pltpu.PrefetchScalarGridSpec(
            num_scalar_prefetch=0,
            grid=(steps,),
            in_specs=[
                pl.BlockSpec((bt, D), lambda i: (i, 0)),    # x streamed over batch
                pl.BlockSpec((D, H2), lambda i: (0, 0)),    # fused layer-1 weights
                pl.BlockSpec((1, H2), lambda i: (0, 0)),    # fused layer-1 bias
                pl.BlockSpec((H2, H2), lambda i: (0, 0)),   # block-diag layer-2
                pl.BlockSpec((1, H2), lambda i: (0, 0)),    # fused layer-2 bias
                pl.BlockSpec((1, H), lambda i: (0, 0)),     # critic_linear weight row
                pl.BlockSpec((1, 1), lambda i: (0, 0)),     # critic_linear bias
            ],
            out_specs=[
                pl.BlockSpec((bt, H), lambda i: (i, 0)),    # actor features
                pl.BlockSpec((bt, 1), lambda i: (i, 0)),    # value
            ],
        ),
        compiler_params=pltpu.CompilerParams(
            dimension_semantics=("parallel",),
        ),
        cost_estimate=cost,
    )(x, packed["w1"], packed["b1"], packed["w2"], packed["b2"],
      packed["wv_row"], packed["bv"])

    # masks / rnn_hxs untouched when base is non-recurrent
    return value, actor_features, rnn_hxs


# --------------------------- parameter construction --------------------------
def init_normc(key, out_features, in_features):
    """PyTorch init_normc_: normal(0,1) rows normalized over in dim; returns (in, out)."""
    w = jax.random.normal(key, (out_features, in_features), dtype=jnp.float32)
    w = w / jnp.sqrt(jnp.sum(jnp.square(w), axis=1, keepdims=True))
    return w.T  # pre-transpose to (in, out) for lane-dense x @ W in the kernel


def make_params(key, num_inputs, hidden_size):
    keys = jax.random.split(key, 5)
    return {
        # actor
        "wa1": init_normc(keys[0], hidden_size, num_inputs),
        "ba1": jnp.zeros((1, hidden_size), jnp.float32),
        "wa2": init_normc(keys[1], hidden_size, hidden_size),
        "ba2": jnp.zeros((1, hidden_size), jnp.float32),
        # critic
        "wc1": init_normc(keys[2], hidden_size, num_inputs),
        "bc1": jnp.zeros((1, hidden_size), jnp.float32),
        "wc2": init_normc(keys[3], hidden_size, hidden_size),
        "bc2": jnp.zeros((1, hidden_size), jnp.float32),
        # critic_linear
        "wv": init_normc(keys[4], 1, hidden_size),           # (H, 1)
        "bv": jnp.zeros((1, 1), jnp.float32),
    }


def pack_params(params, compute_dtype=jnp.float32):
    """Fuse critic/actor towers: layer1 concat (D,2H); layer2 block-diag (2H,2H).
    Weights cast once here (never per call); biases / value head stay f32."""
    D, H = params["wc1"].shape
    w1 = jnp.concatenate([params["wc1"], params["wa1"]], axis=1)            # (D, 2H)
    b1 = jnp.concatenate([params["bc1"], params["ba1"]], axis=1)            # (1, 2H)
    w2 = jnp.zeros((2 * H, 2 * H), jnp.float32)
    w2 = w2.at[:H, :H].set(params["wc2"]).at[H:, H:].set(params["wa2"])     # blockdiag
    b2 = jnp.concatenate([params["bc2"], params["ba2"]], axis=1)            # (1, 2H)
    return {
        "w1": w1.astype(compute_dtype),
        "b1": b1,
        "w2": w2.astype(compute_dtype),
        "b2": b2,
        "wv_row": params["wv"].T,                                           # (1, H) f32
        "bv": params["bv"],                                                 # (1, 1) f32
    }


# ------------------------------ pure-JAX reference ----------------------------
def reference_forward(x, rnn_hxs, params):
    hc = jnp.tanh(x @ params["wc1"] + params["bc1"])
    hc = jnp.tanh(hc @ params["wc2"] + params["bc2"])
    value = hc @ params["wv"] + params["bv"]
    ha = jnp.tanh(x @ params["wa1"] + params["ba1"])
    ha = jnp.tanh(ha @ params["wa2"] + params["ba2"])
    return value, ha, rnn_hxs


if __name__ == "__main__":
    D, H = 32, 64  # obs features, hidden_size -> fused width 2H = 128 (one lane extent)

    key = jax.random.PRNGKey(0)
    k_x, k_p, k_big = jax.random.split(key, 3)
    params = make_params(k_p, D, H)
    packed = pack_params(params)

    # --- small batch (single env step) ---
    B = 8
    x = jax.random.normal(k_x, (B, D), dtype=jnp.float32)
    rnn_hxs = jnp.zeros((B, 1), jnp.float32)   # recurrent_hidden_state_size == 1
    masks = jnp.ones((B, 1), jnp.float32)

    value, actor_features, rnn_out = policy_base_forward(x, rnn_hxs, masks, packed)
    jax.block_until_ready((value, actor_features, rnn_out))

    v_ref, a_ref, _ = reference_forward(x, rnn_hxs, params)
    assert value.shape == (B, 1) and actor_features.shape == (B, H)
    assert jnp.allclose(value, v_ref, atol=1e-5)
    assert jnp.allclose(actor_features, a_ref, atol=1e-5)

    # --- larger rollout batch: exercises ragged last block + multi-step grid ---
    Bb = 1000
    xb = jax.random.normal(k_big, (Bb, D), dtype=jnp.float32)
    hb = jnp.zeros((Bb, 1), jnp.float32)
    mb = jnp.ones((Bb, 1), jnp.float32)
    vb, ab, _ = policy_base_forward(xb, hb, mb, packed, batch_tile=2048)
    jax.block_until_ready((vb, ab))
    vbr, abr, _ = reference_forward(xb, hb, params)
    assert vb.shape == (Bb, 1) and ab.shape == (Bb, H)
    assert jnp.allclose(vb, vbr, atol=1e-4)
    assert jnp.allclose(ab, abr, atol=1e-4)

    # --- bf16 compute path (v6e/v7x MXU/bandwidth win; f32 accumulation,
    #     in-kernel x cast, bf16 actor writeback, f32 value) ---
    packed_bf16 = pack_params(params, compute_dtype=jnp.bfloat16)
    vq, aq, _ = policy_base_forward(x, rnn_hxs, masks, packed_bf16)
    jax.block_until_ready((vq, aq))
    assert aq.dtype == jnp.bfloat16 and vq.dtype == jnp.float32
    assert bool(jnp.all(jnp.isfinite(vq))) and bool(jnp.all(jnp.isfinite(aq.astype(jnp.float32))))
    assert float(jnp.max(jnp.abs(aq.astype(jnp.float32) - a_ref))) < 0.25
    assert float(jnp.max(jnp.abs(vq - v_ref))) < 0.25

    print("KERNEL_OK")
</pallas_src>

<mosaic_0001>
module attributes {stable_mosaic.version = 11 : i64} {
  func.func @fused_mlp_kernel(%arg0: i32, %arg1: memref<8x32xf32, #tpu.memory_space<vmem>>, %arg2: memref<32x128xf32, #tpu.memory_space<vmem>>, %arg3: memref<1x128xf32, #tpu.memory_space<vmem>>, %arg4: memref<128x128xf32, #tpu.memory_space<vmem>>, %arg5: memref<1x128xf32, #tpu.memory_space<vmem>>, %arg6: memref<1x64xf32, #tpu.memory_space<vmem>>, %arg7: memref<1x1xf32, #tpu.memory_space<vmem>>, %arg8: memref<8x64xf32, #tpu.memory_space<vmem>>, %arg9: memref<8x1xf32, #tpu.memory_space<vmem>>) attributes {dimension_semantics = [#tpu.dimension_semantics<parallel>], iteration_bounds = array<i64: 1>, scalar_prefetch = 0 : i64, scratch_operands = 0 : i64, tpu.core_type = #tpu.core_type<tc>, window_params = [{transform_indices = @transform_0, window_bounds = array<i64: 8, 32>}, {pipeline_mode = #tpu.pipeline_mode<synchronous>, transform_indices = @transform_1, window_bounds = array<i64: 32, 128>}, {pipeline_mode = #tpu.pipeline_mode<synchronous>, transform_indices = @transform_2, window_bounds = array<i64: 1, 128>}, {pipeline_mode = #tpu.pipeline_mode<synchronous>, transform_indices = @transform_3, window_bounds = array<i64: 128, 128>}, {pipeline_mode = #tpu.pipeline_mode<synchronous>, transform_indices = @transform_4, window_bounds = array<i64: 1, 128>}, {pipeline_mode = #tpu.pipeline_mode<synchronous>, transform_indices = @transform_5, window_bounds = array<i64: 1, 64>}, {pipeline_mode = #tpu.pipeline_mode<synchronous>, transform_indices = @transform_6, window_bounds = array<i64: 1, 1>}, {transform_indices = @transform_7, window_bounds = array<i64: 8, 64>}, {transform_indices = @transform_8, window_bounds = array<i64: 8, 1>}]} {
    %c0 = arith.constant 0 : index
    %c0_0 = arith.constant 0 : index
    %0 = vector.load %arg1[%c0, %c0_0] : memref<8x32xf32, #tpu.memory_space<vmem>>, vector<8x32xf32>
    %c0_1 = arith.constant 0 : index
    %c0_2 = arith.constant 0 : index
    %1 = vector.load %arg2[%c0_1, %c0_2] : memref<32x128xf32, #tpu.memory_space<vmem>>, vector<32x128xf32>
    %cst = arith.constant dense<0.000000e+00> : vector<8x128xf32>
    %2 = tpu.matmul %0, %1, %cst {dimension_numbers = #tpu.dot_dimension_numbers<[1], [0], [0], [1], [0, 0, 1, 1], [], []>} : vector<8x32xf32>, vector<32x128xf32>, vector<8x128xf32> -> vector<8x128xf32>
    %c0_3 = arith.constant 0 : index
    %c0_4 = arith.constant 0 : index
    %3 = vector.load %arg3[%c0_3, %c0_4] : memref<1x128xf32, #tpu.memory_space<vmem>>, vector<1x128xf32>
    %4 = vector.broadcast %3 : vector<1x128xf32> to vector<8x128xf32>
    %5 = arith.addf %2, %4 : vector<8x128xf32>
    %6 = math.tanh %5 : vector<8x128xf32>
    %c0_5 = arith.constant 0 : index
    %c0_6 = arith.constant 0 : index
    %7 = vector.load %arg4[%c0_5, %c0_6] : memref<128x128xf32, #tpu.memory_space<vmem>>, vector<128x128xf32>
    %cst_7 = arith.constant dense<0.000000e+00> : vector<8x128xf32>
    %8 = tpu.matmul %6, %7, %cst_7 {dimension_numbers = #tpu.dot_dimension_numbers<[1], [0], [0], [1], [0, 0, 1, 1], [], []>} : vector<8x128xf32>, vector<128x128xf32>, vector<8x128xf32> -> vector<8x128xf32>
    %c0_8 = arith.constant 0 : index
    %c0_9 = arith.constant 0 : index
    %9 = vector.load %arg5[%c0_8, %c0_9] : memref<1x128xf32, #tpu.memory_space<vmem>>, vector<1x128xf32>
    %10 = vector.broadcast %9 : vector<1x128xf32> to vector<8x128xf32>
    %11 = arith.addf %8, %10 : vector<8x128xf32>
    %12 = math.tanh %11 : vector<8x128xf32>
    %13 = vector.extract_strided_slice %12 {offsets = [0, 0], sizes = [8, 64], strides = [1, 1]} : vector<8x128xf32> to vector<8x64xf32>
    %c0_10 = arith.constant 0 : index
    %c0_11 = arith.constant 0 : index
    %14 = vector.load %arg6[%c0_10, %c0_11] : memref<1x64xf32, #tpu.memory_space<vmem>>, vector<1x64xf32>
    %15 = vector.broadcast %14 : vector<1x64xf32> to vector<8x64xf32>
    %16 = arith.mulf %13, %15 : vector<8x64xf32>
    %cst_12 = arith.constant dense<0.000000e+00> : vector<8xf32>
    %17 = vector.multi_reduction <add>, %16, %cst_12 [1] : vector<8x64xf32> to vector<8xf32>
    %18 = vector.shape_cast %17 : vector<8xf32> to vector<8x1xf32>
    %c0_13 = arith.constant 0 : index
    %c0_14 = arith.constant 0 : index
    %19 = vector.load %arg7[%c0_13, %c0_14] : memref<1x1xf32, #tpu.memory_space<vmem>>, vector<1x1xf32>
    %20 = vector.broadcast %19 : vector<1x1xf32> to vector<8x1xf32>
    %21 = arith.addf %18, %20 : vector<8x1xf32>
    %c0_15 = arith.constant 0 : index
    %c0_16 = arith.constant 0 : index
    %22 = vector.load %arg9[%c0_15, %c0_16] : memref<8x1xf32, #tpu.memory_space<vmem>>, vector<8x1xf32>
    tpu.vector_store %arg9[%c0_15, %c0_16], %21 {strides = array<i32>} : memref<8x1xf32, #tpu.memory_space<vmem>>, vector<8x1xf32>,
    %23 = vector.extract_strided_slice %12 {offsets = [0, 64], sizes = [8, 64], strides = [1, 1]} : vector<8x128xf32> to vector<8x64xf32>
    %c0_17 = arith.constant 0 : index
    %c0_18 = arith.constant 0 : index
    %24 = vector.load %arg8[%c0_17, %c0_18] : memref<8x64xf32, #tpu.memory_space<vmem>>, vector<8x64xf32>
    tpu.vector_store %arg8[%c0_17, %c0_18], %23 {strides = array<i32>} : memref<8x64xf32, #tpu.memory_space<vmem>>, vector<8x64xf32>,
    return
  }
  func.func @transform_0(%arg0: i32) -> (i32, i32) {
    %c0_i32 = arith.constant 0 : i32
    %c0_i32_0 = arith.constant 0 : i32
    return %arg0, %c0_i32 : i32, i32
  }
  func.func @transform_1(%arg0: i32) -> (i32, i32) {
    %c0_i32 = arith.constant 0 : i32
    %c0_i32_0 = arith.constant 0 : i32
    %c0_i32_1 = arith.constant 0 : i32
    return %c0_i32, %c0_i32_0 : i32, i32
  }
  func.func @transform_2(%arg0: i32) -> (i32, i32) {
    %c0_i32 = arith.constant 0 : i32
    %c0_i32_0 = arith.constant 0 : i32
    %c0_i32_1 = arith.constant 0 : i32
    return %c0_i32, %c0_i32_0 : i32, i32
  }
  func.func @transform_3(%arg0: i32) -> (i32, i32) {
    %c0_i32 = arith.constant 0 : i32
    %c0_i32_0 = arith.constant 0 : i32
    %c0_i32_1 = arith.constant 0 : i32
    return %c0_i32, %c0_i32_0 : i32, i32
  }
  func.func @transform_4(%arg0: i32) -> (i32, i32) {
    %c0_i32 = arith.constant 0 : i32
    %c0_i32_0 = arith.constant 0 : i32
    %c0_i32_1 = arith.constant 0 : i32
    return %c0_i32, %c0_i32_0 : i32, i32
  }
  func.func @transform_5(%arg0: i32) -> (i32, i32) {
    %c0_i32 = arith.constant 0 : i32
    %c0_i32_0 = arith.constant 0 : i32
    %c0_i32_1 = arith.constant 0 : i32
    return %c0_i32, %c0_i32_0 : i32, i32
  }
  func.func @transform_6(%arg0: i32) -> (i32, i32) {
    %c0_i32 = arith.constant 0 : i32
    %c0_i32_0 = arith.constant 0 : i32
    %c0_i32_1 = arith.constant 0 : i32
    return %c0_i32, %c0_i32_0 : i32, i32
  }
  func.func @transform_7(%arg0: i32) -> (i32, i32) {
    %c0_i32 = arith.constant 0 : i32
    %c0_i32_0 = arith.constant 0 : i32
    return %arg0, %c0_i32 : i32, i32
  }
  func.func @transform_8(%arg0: i32) -> (i32, i32) {
    %c0_i32 = arith.constant 0 : i32
    %c0_i32_0 = arith.constant 0 : i32
    return %arg0, %c0_i32 : i32, i32
  }
}

</mosaic_0001>

<bundles_post_ra>
// kernel: tpu_custom_call.1
= control target key start
LH: loop header
LB: loop body
LE: loop exit
PB: predicated region body
PF: predicated region fallthrough
CT: control target
= control target key end

     0   :  { %s633_s0 = inlined_call_operand.hbm [shape: f32[8,32], index: 0, kind: input, shape index: {}]   ;;  %s634_s1 = inlined_call_operand.hbm [shape: f32[32,128], index: 1, kind: input, shape index: {}]   ;;  %s635_s2 = inlined_call_operand.vmem [shape: f32[1,128], index: 2, kind: input, shape index: {}]   ;;  %s636_s3 = inlined_call_operand.hbm [shape: f32[128,128], index: 3, kind: input, shape index: {}]   ;;  %s637_s4 = inlined_call_operand.vmem [shape: f32[1,128], index: 4, kind: input, shape index: {}]   ;;  %s638_s5 = inlined_call_operand.vmem [shape: f32[1,64], index: 5, kind: input, shape index: {}]   ;;  %s639_s6 = inlined_call_operand.<no memory space> [shape: f32[1,1], index: 6, kind: input, shape index: {}]   ;;  %s640_s7 = inlined_call_operand.hbm [shape: f32[8,64], index: 7, kind: output, shape index: {0}]   ;;  %s641_s8 = inlined_call_operand.vmem [shape: f32[8,1], index: 8, kind: output, shape index: {1}]  }
   0x1   :  { %v14_v0 = vstv %s639_s6 }
   0x2   :  { %15 = vst [vmem:[#allocation2] sm:$0x1] %v14_v0 }
   0x3   :  { %16 = vsyncpa [#allocation4], 0 }
   0x4   :  { %17 = vsyncpa [#allocation7], 0 }
   0x5   :  { %18 = vsyncpa [#allocation5], 0  ;;  %s509_s29 = smov [#allocation6]   ;;  %s415_s11 = scalar_lea.hbm %s634_s1, 512 }
   0x6   :  { %s34_s30 = sshll.u32 %s509_s29, 4  ;;  %p416_p0 = scmp.ne.s32.totalorder %s634_s1, %s415_s11  ;;  %s35_s30 = int_to_ptr.vmem [resolvable:$true] %s34_s30 }
   0x7   :  { %p419_p1 = scmp.lt.u32.totalorder %s415_s11, %s634_s1 }
   0x9   :  { %p421_p2 = pnand %p419_p1, %p416_p0 }
   0xb   :  { %424 = shalt.err (!%p421_p2)
}
   0xc   :  { %s425_s6 = scalar_lea.vmem %s35_s30, 512  ;;  %p430_p4 = scmp.lt.s32.totalorder %s35_s30, %s35_s30 }
   0xd   :  { %p426_p3 = scmp.ne.s32.totalorder %s35_s30, %s425_s6  ;;  %p431_p5 = scmp.lt.s32.totalorder %s425_s6, %s425_s6 }
   0xf   :  { %p432_p6 = por %p431_p5, %p430_p4 }
  0x11   :  { %p433_p7 = pnand %p432_p6, %p426_p3 }
  0x13   :  { %436 = shalt.err (!%p433_p7)
}
  0x14   :  { %s510_s16 = smov 128   ;;  %s511_s17 = smov 8  }
  0x15   :  { %40 = dma.hbm_to_vmem [thread:$0]  %s634_s1, 512, %s35_s30, [#allocation7], %s510_s16, %s510_s16, %s511_s17  }
  0x16   :  { %s512_s20 = smov [#allocation3]   ;;  %s513_s22 = smov [#allocation8]  }
  0x17   :  { %s25_s21 = sshll.u32 %s512_s20, 4  ;;  %s48_s23 = sshll.u32 %s513_s22, 4  ;;  %s26_s21 = int_to_ptr.vmem [resolvable:$true] %s25_s21  ;;  %s49_s23 = int_to_ptr.vmem [resolvable:$true] %s48_s23 }
  0x18   :  { %s437_s26 = scalar_lea.hbm %s633_s0, 128 }
  0x19   :  { %p438_p8 = scmp.ne.s32.totalorder %s633_s0, %s437_s26  ;;  %p441_p9 = scmp.lt.u32.totalorder %s437_s26, %s633_s0 }
  0x1b   :  { %p443_p10 = pnand %p441_p9, %p438_p8 }
  0x1d   :  { %446 = shalt.err (!%p443_p10)
}
  0x1e   :  { %s447_s1 = scalar_lea.vmem %s26_s21, 128  ;;  %p452_p12 = scmp.lt.s32.totalorder %s26_s21, %s26_s21 }
  0x1f   :  { %p448_p11 = scmp.ne.s32.totalorder %s26_s21, %s447_s1  ;;  %p453_p13 = scmp.lt.s32.totalorder %s447_s1, %s447_s1 }
  0x21   :  { %p454_p0 = por %p453_p13, %p452_p12 }
  0x23   :  { %p455_p1 = pnand %p454_p0, %p448_p11 }
  0x25   :  { %458 = shalt.err (!%p455_p1)
}
  0x26   :  { %28 = dma.hbm_to_vmem [thread:$0]  %s633_s0, 128, %s26_s21, [#allocation4]  }
  0x27   :  { %s459_s13 = scalar_lea.hbm %s636_s3, 2048 }
  0x28   :  { %p460_p2 = scmp.ne.s32.totalorder %s636_s3, %s459_s13  ;;  %p463_p3 = scmp.lt.u32.totalorder %s459_s13, %s636_s3 }
  0x2a   :  { %p465_p4 = pnand %p463_p3, %p460_p2 }
  0x2c   :  { %468 = shalt.err (!%p465_p4)
}
  0x2d   :  { %s469_s19 = scalar_lea.vmem %s49_s23, 2048  ;;  %p474_p6 = scmp.lt.s32.totalorder %s49_s23, %s49_s23 }
  0x2e   :  { %p470_p5 = scmp.ne.s32.totalorder %s49_s23, %s469_s19  ;;  %p475_p7 = scmp.lt.s32.totalorder %s469_s19, %s469_s19 }
  0x30   :  { %p476_p8 = por %p475_p7, %p474_p6 }
  0x32   :  { %p477_p9 = pnand %p476_p8, %p470_p5 }
  0x34   :  { %480 = shalt.err (!%p477_p9)
}
  0x35   :  { %54 = dma.hbm_to_vmem [thread:$0]  %s636_s3, 2048, %s49_s23, [#allocation7], %s510_s16, %s510_s16, %s511_s17  }
  0x36   :  { %503 = dma.done.wait [#allocation4], 128  }
  0x37   :  { %504 = vsyncadd [#allocation4], 4294967168 }
  0x38   :  { %505 = dma.done.wait [#allocation7], 2560  }
  0x39   :  { %506 = vsyncadd [#allocation7], 4294964736  ;;  %v514_v1 = vmov 0.0|0.0   ;;  %vm515_vm0 = vmmov 0   ;;  %v516_v2 = vmov 0.0   ;;  %v71_v3 = vld [vmem:[#allocation6] sm:$0xff] }
  0x3a   :  { %371 = vmatprep.subr.bf16.mxu0 %v514_v1  ;;  %333 = vmatprep.mubr.msk.f32.mxu0 %vm515_vm0, %v516_v2  ;;  %v72_v4 = vld [vmem:[#allocation6 + $0x8] sm:$0xff]  ;;  %v73_v5 = vld [vmem:[#allocation6 + $0x10] sm:$0xff]  ;;  %v74_v7 = vld [vmem:[#allocation6 + $0x18] sm:$0xff]  ;;  %vm82_vm1 = vcmask 261120   ;;  %vm259_vm2 = vcmask 523264   ;;  %vm271_vm3 = vcmask 7168  }
  0x3b   :  { %377 = vmatprep.subr.bf16.mxu1 %v514_v1  ;;  %368 = vmatprep.mubr.msk.f32.mxu1 %vm515_vm0, %v516_v2  ;;  %v372_v6 = vpack.c.bf16 %v72_v4, %v71_v3  ;;  %v157_v8 = vld [vmem:[#allocation8] sm:$0xff]  ;;  %v158_v9 = vld [vmem:[#allocation8 + $0x8] sm:$0xff]  ;;  %v159_v10 = vld [vmem:[#allocation8 + $0x10] sm:$0xff]  ;;  %v375_v12 = vpack.c.bf16 %v74_v7, %v73_v5  ;;  %s518_s24 = smov [#allocation9]  }
  0x3c   :  { %v160_v11 = vld [vmem:[#allocation8 + $0x18] sm:$0xff]  ;;  %v378_v13 = vpack.c.bf16 %v158_v9, %v157_v8  ;;  %v161_v15 = vld [vmem:[#allocation8 + $0x20] sm:$0xff]  ;;  %v162_v16 = vld [vmem:[#allocation8 + $0x28] sm:$0xff] }
  0x3d   :  { %373 = vmatpush3.bf16.msra.mxu0 %v372_v6  ;;  %v381_v14 = vpack.c.bf16 %v160_v11, %v159_v10  ;;  %v70_v17 = vld [vmem:[#allocation3] sm:$0xff]  ;;  %v384_v18 = vpack.c.bf16 %v162_v16, %v161_v15  ;;  %v163_v19 = vld [vmem:[#allocation8 + $0x30] sm:$0xff]  ;;  %v165_v22 = vld [vmem:[#allocation8 + $0x40] sm:$0xff] }
  0x3e   :  { %374 = vmatprep.subr.bf16.mxu0 %v514_v1  ;;  %379 = vmatpush3.bf16.msra.mxu1 %v378_v13  ;;  %v164_v20 = vld [vmem:[#allocation8 + $0x38] sm:$0xff]  ;;  %v166_v23 = vld [vmem:[#allocation8 + $0x48] sm:$0xff]  ;;  %v167_v25 = vld [vmem:[#allocation8 + $0x50] sm:$0xff] }
  0x3f   :  { %380 = vmatprep.subr.bf16.mxu1 %v514_v1  ;;  %v387_v21 = vpack.c.bf16 %v164_v20, %v163_v19  ;;  %v390_v24 = vpack.c.bf16 %v166_v23, %v165_v22  ;;  %v168_v26 = vld [vmem:[#allocation8 + $0x58] sm:$0xff]  ;;  %v169_v28 = vld [vmem:[#allocation8 + $0x60] sm:$0xff]  ;;  %v170_v29 = vld [vmem:[#allocation8 + $0x68] sm:$0xff] }
  0x40   :  { %v393_v27 = vpack.c.bf16 %v168_v26, %v167_v25  ;;  %v396_v30 = vpack.c.bf16 %v170_v29, %v169_v28  ;;  %v171_v31 = vld [vmem:[#allocation8 + $0x70] sm:$0xff]  ;;  %v172_v32 = vld [vmem:[#allocation8 + $0x78] sm:$0xff] }
  0x41   :  { %376 = vmatpush3.bf16.msra.mxu0 %v375_v12  ;;  %v399_v33 = vpack.c.bf16 %v172_v32, %v171_v31  ;;  %v298_v34 = vld [vmem:[%s635_s2] ss:$0 sm:$0xff]  ;;  %s517_s2 = smov 64  }
  0x42   :  { %382 = vmatpush3.bf16.msra.mxu1 %v381_v14  ;;  %v300_v39 = vld [vmem:[%s637_s4] ss:$0 sm:$0xff]  ;;  %s284_s4 = sshll.u32 %s518_s24, 4  ;;  %s285_s4 = int_to_ptr.vmem [resolvable:$true] %s284_s4 }
  0x43   :  { %383 = vmatprep.subr.bf16.mxu1 %v514_v1  ;;  %v301_v43 = vld [vmem:[%s638_s5] ss:$0 sm:$0xff]  ;;  %s481_s5 = scalar_lea.vmem %s285_s4, 128  ;;  %p486_p11 = scmp.lt.s32.totalorder %s285_s4, %s285_s4 }
  0x44   :  { %334 = vmatmul.mubr.msk.f32.vlgmr.msra.gmra.mrb[0].mxu0 %vm82_vm1, %v70_v17  ;;  %v302_v47 = vld [vmem:[#allocation2] ss:$0 sm:$0xff]  ;;  %p482_p10 = scmp.ne.s32.totalorder %s285_s4, %s481_s5  ;;  %p487_p12 = scmp.lt.s32.totalorder %s481_s5, %s481_s5 }
  0x46   :  { %385 = vmatpush3.bf16.msra.mxu1 %v384_v18  ;;  %p488_p13 = por %p487_p12, %p486_p11 }
  0x47   :  { %386 = vmatprep.subr.bf16.mxu1 %v514_v1 }
  0x48   :  { %p489_p0 = pnand %p488_p13, %p482_p10 }
  0x4a   :  { %388 = vmatpush3.bf16.msra.mxu1 %v387_v21 }
  0x4b   :  { %389 = vmatprep.subr.bf16.mxu1 %v514_v1 }
  0x4e   :  { %391 = vmatpush3.bf16.msra.mxu1 %v390_v24 }
  0x4f   :  { %392 = vmatprep.subr.bf16.mxu1 %v514_v1 }
  0x52   :  { %394 = vmatpush3.bf16.msra.mxu1 %v393_v27 }
  0x53   :  { %395 = vmatprep.subr.bf16.mxu1 %v514_v1 }
  0x56   :  { %397 = vmatpush3.bf16.msra.mxu1 %v396_v30 }
  0x57   :  { %398 = vmatprep.subr.bf16.mxu1 %v514_v1 }
  0x5a   :  { %400 = vmatpush3.bf16.msra.mxu1 %v399_v33 }
 0x117   :  { %v152_v35 = vpop.f32.mrb[0].mxu0 }
 0x118   :  { %v153_v36 = vadd.f32 %v298_v34, %v152_v35  ;;  %v335_v37 = vpop.f32.mrb[1].mxu0 }
 0x11a   :  { %411 = vtanh.f32 %v153_v36 }
 0x124   :  { %v412_v38 = vpop.eup %411 }
 0x125   :  { %369 = vmatmul.mubr.f32.vlgmr.msra.gmra.mrb[0].mxu1 %v412_v38 }
 0x1f8   :  { %v246_v40 = vpop.f32.mrb[0].mxu1 }
 0x1f9   :  { %v247_v41 = vadd.f32 %v300_v39, %v246_v40  ;;  %v370_v42 = vpop.f32.mrb[1].mxu1 }
 0x1fb   :  { %413 = vtanh.f32 %v247_v41 }
 0x205   :  { %v414_v44 = vpop.eup %413 }
 0x206   :  { %v258_v45 = vmul.f32 %v414_v44, %v301_v43 }
 0x208   :  { %v260_v46 = vsel %vm259_vm2, %v258_v45, 0.0 }
 0x209   :  { %261 = vadd.xlane.f32.xlu0 %v260_v46 }
 0x21f   :  { %274 = vrot.lane.b32.xlu0 %v414_v44, %s517_s2 }
 0x296   :  { %v262_v48 = vpop.xlane.xlu0 %261 }
 0x297   :  { %v270_v49 = vadd.f32 %v302_v47, %v262_v48 }
 0x299   :  { %272 = vst.msk [vmem:[%s641_s8] sm:$0xff] %vm271_vm3, %v270_v49 }
 0x29a   :  { %v275_v50 = vpop.permute.xlu0 %274 }
 0x29b   :  { %277 = vst.msk [vmem:[#allocation9] sm:$0xff] %vm259_vm2, %v275_v50 }
 0x29c   :  { %492 = shalt.err (!%p489_p0)
}
 0x29d   :  { %s493_s29 = scalar_lea.hbm %s640_s7, 128 }
 0x29e   :  { %p494_p1 = scmp.ne.s32.totalorder %s640_s7, %s493_s29  ;;  %p497_p2 = scmp.lt.u32.totalorder %s493_s29, %s640_s7 }
 0x2a0   :  { %p499_p3 = pnand %p497_p2, %p494_p1 }
 0x2a2   :  { %502 = shalt.err (!%p499_p3)
}
 0x2a3   :  { %287 = dma.vmem_to_hbm [thread:$0]  %s285_s4, 128, %s640_s7, [#allocation5]  }
 0x2a4   :  { %507 = dma.done.wait [#allocation5], 128  }
 0x2a5   :  { %508 = vsyncadd [#allocation5], 4294967168 }
 0x2a6   :  { %295 = vsyncpa [#allocation4], 1 }
 0x2a7   :  { %296 = vsyncpa [#allocation7], 1 }
 0x2a8   :  { %297 = vsyncpa [#allocation5], 1 }

</bundles_post_ra>
